<compile_context>
chip_gen: v7x
topology: tpu7x:2x2x1
jax: 0.10.0
libtpu: 0.0.40
codegen_flags: <defaults>
</compile_context>

<pallas_src>
import functools
import math

import jax
import jax.numpy as jnp
from jax import lax
from jax.experimental import pallas as pl
from jax.experimental.pallas import tpu as pltpu


# --------------------------------------------------------------------------------------
# Kernel 1: fused QKV projection + lane-dense RoPE
# --------------------------------------------------------------------------------------
def _qkv_rope_kernel(x_ref, w_ref, cos_ref, sin_ref, q_ref, k_ref, v_ref):
    D = x_ref.shape[2]
    D2 = D // 2

    x = x_ref[0]                                  # (Ts, D)   bf16
    c = cos_ref[...]                              # (Ts, D/2) f32
    s = sin_ref[...]                              # (Ts, D/2) f32

    # Fused QKV projection: one lane-dense bf16 MXU matmul, f32 accumulation.
    # (1/sqrt(hd) is pre-folded into the Q columns by the wrapper.)
    qkv = jnp.dot(x, w_ref[...], preferred_element_type=jnp.float32)   # (Ts, 3D) f32

    # Full-width rotary.  Q/K weight columns were permuted in the wrapper to
    # [all heads' first rotary halves | all heads' second halves], so
    # rotate-half is just two slab-level slices (no per-head concat, no
    # (S, half) narrow operands).  out1 = x1*c - x2*s ; out2 = x2*c + x1*s.
    q1, q2 = qkv[:, :D2], qkv[:, D2:D]
    q_ref[0, :, :D2] = (q1 * c - q2 * s).astype(q_ref.dtype)
    q_ref[0, :, D2:] = (q2 * c + q1 * s).astype(q_ref.dtype)

    k1, k2 = qkv[:, D:D + D2], qkv[:, D + D2:2 * D]
    k_ref[0, :, :D2] = (k1 * c - k2 * s).astype(k_ref.dtype)
    k_ref[0, :, D2:] = (k2 * c + k1 * s).astype(k_ref.dtype)

    v_ref[0] = qkv[:, 2 * D:].astype(v_ref.dtype)


# --------------------------------------------------------------------------------------
# Kernel 2: flash attention (online softmax over KV tiles) + fused output projection
# --------------------------------------------------------------------------------------
def _flash_attn_kernel(q_ref, k_ref, v_ref, wo_ref, out_ref,
                       m_scr, l_scr, acc_scr, *, n_heads):
    ki = pl.program_id(2)

    @pl.when(ki == 0)
    def _():
        m_scr[...] = jnp.full_like(m_scr, -jnp.inf)
        l_scr[...] = jnp.zeros_like(l_scr)
        acc_scr[...] = jnp.zeros_like(acc_scr)

    D = q_ref.shape[2]
    D2 = D // 2
    hd = D // n_heads
    half = hd // 2

    # One head at a time (trace-time loop); per-head running state is committed
    # to VMEM scratch every head so live ranges stay bounded per head.
    for h in range(n_heads):
        a0, a1 = h * half, (h + 1) * half
        # Head-h score = contribution of its first-half block + second-half block
        # (columns are in the permuted rotary layout; the sum equals q_h . k_h).
        s = lax.dot_general(q_ref[0, :, a0:a1], k_ref[0, :, a0:a1],
                            (((1,), (1,)), ((), ())),
                            preferred_element_type=jnp.float32)
        s = s + lax.dot_general(q_ref[0, :, D2 + a0:D2 + a1],
                                k_ref[0, :, D2 + a0:D2 + a1],
                                (((1,), (1,)), ((), ())),
                                preferred_element_type=jnp.float32)     # (Tq, Tk)

        m_prev = m_scr[:, h:h + 1]                                      # (Tq, 1)
        l_prev = l_scr[:, h:h + 1]
        m_new = jnp.maximum(m_prev, jnp.max(s, axis=-1, keepdims=True))
        alpha = jnp.exp(m_prev - m_new)
        p = jnp.exp(s - m_new)                                          # (Tq, Tk) f32

        c0, c1 = h * hd, (h + 1) * hd                                   # V / acc cols
        pv = jnp.dot(p.astype(v_ref.dtype), v_ref[0, :, c0:c1],
                     preferred_element_type=jnp.float32)                # (Tq, hd)
        acc_scr[:, c0:c1] = alpha * acc_scr[:, c0:c1] + pv
        l_scr[:, h:h + 1] = alpha * l_prev + jnp.sum(p, axis=-1, keepdims=True)
        m_scr[:, h:h + 1] = m_new

    # Epilogue: normalise AFTER the PV matmul (O(S*D) multiplies, not O(S^2)),
    # then the fused (Tq, D) @ (D, D) output projection.
    @pl.when(ki == pl.num_programs(2) - 1)
    def _():
        for h in range(n_heads):
            c0, c1 = h * hd, (h + 1) * hd
            inv_l = pl.reciprocal(l_scr[:, h:h + 1], approx=True)
            acc_scr[:, c0:c1] = acc_scr[:, c0:c1] * inv_l
        o = acc_scr[...].astype(wo_ref.dtype)                            # (Tq, D) bf16
        out_ref[0] = jnp.dot(o, wo_ref[...],
                             preferred_element_type=jnp.float32).astype(out_ref.dtype)


# --------------------------------------------------------------------------------------
# Wrapper
# --------------------------------------------------------------------------------------
def _pick_tile(n, preferred):
    for t in (preferred, 512, 256, 128, 64, 32, 16, 8):
        if t <= n and n % t == 0:
            return t
    return n


def attention_forward(x, wqkv, wo, *, n_heads,
                      s_tile=256, q_tile=256, kv_tile=256, out_dtype=None):
    """gLM2 Attention forward (attention_mask=None path).

    x: (B, S, D); wqkv: (3D, D) PyTorch Linear weight; wo: (D, D).
    Tile defaults (256) suit v6e/v7x MXU; use 128 on v5e.
    """
    B, S, D = x.shape
    assert D % n_heads == 0
    hd = D // n_heads
    assert hd % 2 == 0
    half = hd // 2
    D2 = D // 2
    out_dtype = x.dtype if out_dtype is None else out_dtype

    Ts = _pick_tile(S, s_tile)
    Tq = _pick_tile(S, q_tile)
    Tk = _pick_tile(S, kv_tile)

    # ---- weight prep (one-off, wrapper side) ----
    w_t = wqkv.T.astype(jnp.float32)                               # (D, 3D)
    scale = 1.0 / math.sqrt(hd)
    # Column permutation: all heads' first rotary halves, then all second halves.
    base = (jnp.arange(n_heads)[:, None] * hd
            + jnp.arange(half)[None, :]).reshape(-1)               # (D/2,)
    perm = jnp.concatenate([base, base + half])                    # (D,)
    wq = (w_t[:, :D] * scale)[:, perm]
    wk = w_t[:, D:2 * D][:, perm]
    wv = w_t[:, 2 * D:]
    w_fused = jnp.concatenate([wq, wk, wv], axis=1).astype(jnp.bfloat16)   # (D, 3D)
    wo_t = wo.T.astype(jnp.bfloat16)                               # (D, D)

    # Rotary cache (base=10000, pos_idx_in_fp32), tiled to full slab half-width.
    inv_freq = 1.0 / (10000.0 ** (jnp.arange(0, hd, 2, dtype=jnp.float32) / hd))
    freqs = jnp.outer(jnp.arange(S, dtype=jnp.float32), inv_freq)  # (S, half)
    cos_full = jnp.tile(jnp.cos(freqs), (1, n_heads))              # (S, D/2)
    sin_full = jnp.tile(jnp.sin(freqs), (1, n_heads))

    x_bf16 = x.astype(jnp.bfloat16)

    # ---- kernel 1: QKV projection + RoPE ----
    proj_cost = pl.CostEstimate(
        flops=int(2 * B * S * D * 3 * D + 8 * B * S * D),
        transcendentals=0,
        bytes_accessed=int(2 * B * S * D + 2 * D * 3 * D
                           + 2 * 4 * S * D2 + 3 * 2 * B * S * D))
    q_rot, k_rot, v = pl.pallas_call(
        _qkv_rope_kernel,
        out_shape=(jax.ShapeDtypeStruct((B, S, D), jnp.bfloat16),
                   jax.ShapeDtypeStruct((B, S, D), jnp.bfloat16),
                   jax.ShapeDtypeStruct((B, S, D), jnp.bfloat16)),
        grid_spec=pltpu.PrefetchScalarGridSpec(
            num_scalar_prefetch=0,
            grid=(B, S // Ts),
            in_specs=[
                pl.BlockSpec((1, Ts, D), lambda b, si: (b, si, 0)),    # x (bf16)
                pl.BlockSpec((D, 3 * D), lambda b, si: (0, 0)),        # fused W (bf16)
                pl.BlockSpec((Ts, D2), lambda b, si: (si, 0)),         # cos
                pl.BlockSpec((Ts, D2), lambda b, si: (si, 0)),         # sin
            ],
            out_specs=(pl.BlockSpec((1, Ts, D), lambda b, si: (b, si, 0)),
                       pl.BlockSpec((1, Ts, D), lambda b, si: (b, si, 0)),
                       pl.BlockSpec((1, Ts, D), lambda b, si: (b, si, 0))),
        ),
        compiler_params=pltpu.CompilerParams(
            dimension_semantics=("parallel", "parallel"),
            vmem_limit_bytes=48 * 1024 * 1024),
        cost_estimate=proj_cost,
    )(x_bf16, w_fused, cos_full, sin_full)

    # ---- kernel 2: flash attention + fused output projection ----
    n_q = S // Tq
    attn_cost = pl.CostEstimate(
        flops=int(B * (4 * S * S * D + 2 * S * D * D)),
        transcendentals=int(B * n_heads * S * S),
        bytes_accessed=int(2 * B * S * D + 2 * 2 * B * S * D * n_q + 2 * D * D
                           + B * S * D * jnp.dtype(out_dtype).itemsize))
    out = pl.pallas_call(
        functools.partial(_flash_attn_kernel, n_heads=n_heads),
        out_shape=jax.ShapeDtypeStruct((B, S, D), out_dtype),
        grid_spec=pltpu.PrefetchScalarGridSpec(
            num_scalar_prefetch=0,
            grid=(B, S // Tq, S // Tk),
            in_specs=[
                pl.BlockSpec((1, Tq, D), lambda b, qi, ki: (b, qi, 0)),   # q
                pl.BlockSpec((1, Tk, D), lambda b, qi, ki: (b, ki, 0)),   # k
                pl.BlockSpec((1, Tk, D), lambda b, qi, ki: (b, ki, 0)),   # v
                pl.BlockSpec((D, D), lambda b, qi, ki: (0, 0)),           # Wo^T
            ],
            out_specs=pl.BlockSpec((1, Tq, D), lambda b, qi, ki: (b, qi, 0)),
            scratch_shapes=[
                pltpu.VMEM((Tq, n_heads), jnp.float32),   # running row-max per head
                pltpu.VMEM((Tq, n_heads), jnp.float32),   # running row-sum per head
                pltpu.VMEM((Tq, D), jnp.float32),         # un-normalised PV accumulator
            ],
        ),
        compiler_params=pltpu.CompilerParams(
            dimension_semantics=("parallel", "parallel", "arbitrary"),
            vmem_limit_bytes=32 * 1024 * 1024),
        cost_estimate=attn_cost,
    )(q_rot, k_rot, v, wo_t)
    return out


# --------------------------------------------------------------------------------------
# Pure-JAX f32 reference (matches the PyTorch forward, attention_mask=None)
# --------------------------------------------------------------------------------------
def attention_reference(x, wqkv, wo, *, n_heads):
    B, S, D = x.shape
    hd = D // n_heads
    qkv = x @ wqkv.T                                              # (B, S, 3D)
    qkv = qkv.reshape(B, S, 3, n_heads, hd)
    q, k, v = qkv[:, :, 0], qkv[:, :, 1], qkv[:, :, 2]            # (B, S, H, hd)

    inv_freq = 1.0 / (10000.0 ** (jnp.arange(0, hd, 2, dtype=jnp.float32) / hd))
    freqs = jnp.outer(jnp.arange(S, dtype=jnp.float32), inv_freq)
    cos = jnp.concatenate([jnp.cos(freqs)] * 2, -1)[None, :, None, :]
    sin = jnp.concatenate([jnp.sin(freqs)] * 2, -1)[None, :, None, :]

    def rot_half(t):
        return jnp.concatenate([-t[..., hd // 2:], t[..., :hd // 2]], axis=-1)

    q = q * cos + rot_half(q) * sin
    k = k * cos + rot_half(k) * sin

    qh = q.transpose(0, 2, 1, 3)
    kh = k.transpose(0, 2, 1, 3)
    vh = v.transpose(0, 2, 1, 3)
    scores = jnp.einsum('bhqd,bhkd->bhqk', qh, kh) / math.sqrt(hd)
    p = jax.nn.softmax(scores, axis=-1)
    o = jnp.einsum('bhqk,bhkd->bhqd', p, vh)
    o = o.transpose(0, 2, 1, 3).reshape(B, S, D)
    return o @ wo.T


if __name__ == "__main__":
    B, S, D, H = 2, 8, 32, 4   # bsz=2, seqlen=8, dim=32, heads=4 -> head_dim=8

    key = jax.random.PRNGKey(0)
    kx, kqkv, ko = jax.random.split(key, 3)
    x = jax.random.normal(kx, (B, S, D), dtype=jnp.float32)
    wqkv = jax.random.normal(kqkv, (3 * D, D), dtype=jnp.float32) * 0.05
    wo = jax.random.normal(ko, (D, D), dtype=jnp.float32) * 0.05

    out = attention_forward(x, wqkv, wo, n_heads=H)
    out = jax.block_until_ready(out)

    ref = attention_reference(x, wqkv, wo, n_heads=H)
    assert out.shape == (B, S, D)
    # bf16 MXU inputs + approx reciprocal vs f32 reference -> loosened tolerance.
    err = jnp.max(jnp.abs(out - ref))
    assert jnp.allclose(out, ref, atol=2e-2, rtol=2e-2), f"max abs diff {err}"

    print("KERNEL_OK")
</pallas_src>

<mosaic_0001>
module attributes {stable_mosaic.version = 11 : i64} {
  func.func @_qkv_rope_kernel(%arg0: i32, %arg1: i32, %arg2: memref<1x8x32xbf16, #tpu.memory_space<vmem>>, %arg3: memref<32x96xbf16, #tpu.memory_space<vmem>>, %arg4: memref<8x16xf32, #tpu.memory_space<vmem>>, %arg5: memref<8x16xf32, #tpu.memory_space<vmem>>, %arg6: memref<1x8x32xbf16, #tpu.memory_space<vmem>>, %arg7: memref<1x8x32xbf16, #tpu.memory_space<vmem>>, %arg8: memref<1x8x32xbf16, #tpu.memory_space<vmem>>) attributes {dimension_semantics = [#tpu.dimension_semantics<parallel>, #tpu.dimension_semantics<parallel>], iteration_bounds = array<i64: 2, 1>, scalar_prefetch = 0 : i64, scratch_operands = 0 : i64, tpu.core_type = #tpu.core_type<tc>, window_params = [{transform_indices = @transform_0, window_bounds = array<i64: 1, 8, 32>}, {pipeline_mode = #tpu.pipeline_mode<synchronous>, transform_indices = @transform_1, window_bounds = array<i64: 32, 96>}, {transform_indices = @transform_2, window_bounds = array<i64: 8, 16>}, {transform_indices = @transform_3, window_bounds = array<i64: 8, 16>}, {transform_indices = @transform_4, window_bounds = array<i64: 1, 8, 32>}, {transform_indices = @transform_5, window_bounds = array<i64: 1, 8, 32>}, {transform_indices = @transform_6, window_bounds = array<i64: 1, 8, 32>}]} {
    %c0 = arith.constant 0 : index
    %c0_0 = arith.constant 0 : index
    %c0_1 = arith.constant 0 : index
    %0 = vector.load %arg2[%c0, %c0_0, %c0_1] : memref<1x8x32xbf16, #tpu.memory_space<vmem>>, vector<1x8x32xbf16>
    %1 = vector.shape_cast %0 : vector<1x8x32xbf16> to vector<8x32xbf16>
    %c0_2 = arith.constant 0 : index
    %c0_3 = arith.constant 0 : index
    %2 = vector.load %arg4[%c0_2, %c0_3] : memref<8x16xf32, #tpu.memory_space<vmem>>, vector<8x16xf32>
    %c0_4 = arith.constant 0 : index
    %c0_5 = arith.constant 0 : index
    %3 = vector.load %arg5[%c0_4, %c0_5] : memref<8x16xf32, #tpu.memory_space<vmem>>, vector<8x16xf32>
    %c0_6 = arith.constant 0 : index
    %c0_7 = arith.constant 0 : index
    %4 = vector.load %arg3[%c0_6, %c0_7] : memref<32x96xbf16, #tpu.memory_space<vmem>>, vector<32x96xbf16>
    %cst = arith.constant dense<0.000000e+00> : vector<8x96xf32>
    %5 = tpu.matmul %1, %4, %cst {dimension_numbers = #tpu.dot_dimension_numbers<[1], [0], [0], [1], [0, 0, 1, 1], [], []>} : vector<8x32xbf16>, vector<32x96xbf16>, vector<8x96xf32> -> vector<8x96xf32>
    %6 = vector.extract_strided_slice %5 {offsets = [0, 0], sizes = [8, 16], strides = [1, 1]} : vector<8x96xf32> to vector<8x16xf32>
    %7 = vector.extract_strided_slice %5 {offsets = [0, 16], sizes = [8, 16], strides = [1, 1]} : vector<8x96xf32> to vector<8x16xf32>
    %8 = arith.mulf %6, %2 : vector<8x16xf32>
    %9 = arith.mulf %7, %3 : vector<8x16xf32>
    %10 = arith.subf %8, %9 : vector<8x16xf32>
    %11 = arith.truncf %10 : vector<8x16xf32> to vector<8x16xbf16>
    %c0_8 = arith.constant 0 : index
    %c0_9 = arith.constant 0 : index
    %c0_10 = arith.constant 0 : index
    %12 = vector.load %arg6[%c0_8, %c0_9, %c0_10] : memref<1x8x32xbf16, #tpu.memory_space<vmem>>, vector<1x8x16xbf16>
    %13 = vector.shape_cast %12 : vector<1x8x16xbf16> to vector<8x16xbf16>
    %14 = vector.shape_cast %11 : vector<8x16xbf16> to vector<1x8x16xbf16>
    tpu.vector_store %arg6[%c0_8, %c0_9, %c0_10], %14 {strides = array<i32>} : memref<1x8x32xbf16, #tpu.memory_space<vmem>>, vector<1x8x16xbf16>,
    %15 = arith.mulf %7, %2 : vector<8x16xf32>
    %16 = arith.mulf %6, %3 : vector<8x16xf32>
    %17 = arith.addf %15, %16 : vector<8x16xf32>
    %18 = arith.truncf %17 : vector<8x16xf32> to vector<8x16xbf16>
    %c0_11 = arith.constant 0 : index
    %c0_12 = arith.constant 0 : index
    %c16 = arith.constant 16 : index
    %19 = vector.load %arg6[%c0_11, %c0_12, %c16] : memref<1x8x32xbf16, #tpu.memory_space<vmem>>, vector<1x8x16xbf16>
    %20 = vector.shape_cast %19 : vector<1x8x16xbf16> to vector<8x16xbf16>
    %21 = vector.shape_cast %18 : vector<8x16xbf16> to vector<1x8x16xbf16>
    tpu.vector_store %arg6[%c0_11, %c0_12, %c16], %21 {strides = array<i32>} : memref<1x8x32xbf16, #tpu.memory_space<vmem>>, vector<1x8x16xbf16>,
    %22 = vector.extract_strided_slice %5 {offsets = [0, 32], sizes = [8, 16], strides = [1, 1]} : vector<8x96xf32> to vector<8x16xf32>
    %23 = vector.extract_strided_slice %5 {offsets = [0, 48], sizes = [8, 16], strides = [1, 1]} : vector<8x96xf32> to vector<8x16xf32>
    %24 = arith.mulf %22, %2 : vector<8x16xf32>
    %25 = arith.mulf %23, %3 : vector<8x16xf32>
    %26 = arith.subf %24, %25 : vector<8x16xf32>
    %27 = arith.truncf %26 : vector<8x16xf32> to vector<8x16xbf16>
    %c0_13 = arith.constant 0 : index
    %c0_14 = arith.constant 0 : index
    %c0_15 = arith.constant 0 : index
    %28 = vector.load %arg7[%c0_13, %c0_14, %c0_15] : memref<1x8x32xbf16, #tpu.memory_space<vmem>>, vector<1x8x16xbf16>
    %29 = vector.shape_cast %28 : vector<1x8x16xbf16> to vector<8x16xbf16>
    %30 = vector.shape_cast %27 : vector<8x16xbf16> to vector<1x8x16xbf16>
    tpu.vector_store %arg7[%c0_13, %c0_14, %c0_15], %30 {strides = array<i32>} : memref<1x8x32xbf16, #tpu.memory_space<vmem>>, vector<1x8x16xbf16>,
    %31 = arith.mulf %23, %2 : vector<8x16xf32>
    %32 = arith.mulf %22, %3 : vector<8x16xf32>
    %33 = arith.addf %31, %32 : vector<8x16xf32>
    %34 = arith.truncf %33 : vector<8x16xf32> to vector<8x16xbf16>
    %c0_16 = arith.constant 0 : index
    %c0_17 = arith.constant 0 : index
    %c16_18 = arith.constant 16 : index
    %35 = vector.load %arg7[%c0_16, %c0_17, %c16_18] : memref<1x8x32xbf16, #tpu.memory_space<vmem>>, vector<1x8x16xbf16>
    %36 = vector.shape_cast %35 : vector<1x8x16xbf16> to vector<8x16xbf16>
    %37 = vector.shape_cast %34 : vector<8x16xbf16> to vector<1x8x16xbf16>
    tpu.vector_store %arg7[%c0_16, %c0_17, %c16_18], %37 {strides = array<i32>} : memref<1x8x32xbf16, #tpu.memory_space<vmem>>, vector<1x8x16xbf16>,
    %38 = vector.extract_strided_slice %5 {offsets = [0, 64], sizes = [8, 32], strides = [1, 1]} : vector<8x96xf32> to vector<8x32xf32>
    %39 = arith.truncf %38 : vector<8x32xf32> to vector<8x32xbf16>
    %c0_19 = arith.constant 0 : index
    %c0_20 = arith.constant 0 : index
    %c0_21 = arith.constant 0 : index
    %40 = vector.load %arg8[%c0_19, %c0_20, %c0_21] : memref<1x8x32xbf16, #tpu.memory_space<vmem>>, vector<1x8x32xbf16>
    %41 = vector.shape_cast %40 : vector<1x8x32xbf16> to vector<8x32xbf16>
    %42 = vector.shape_cast %39 : vector<8x32xbf16> to vector<1x8x32xbf16>
    tpu.vector_store %arg8[%c0_19, %c0_20, %c0_21], %42 {strides = array<i32>} : memref<1x8x32xbf16, #tpu.memory_space<vmem>>, vector<1x8x32xbf16>,
    return
  }
  func.func @transform_0(%arg0: i32, %arg1: i32) -> (i32, i32, i32) {
    %c0_i32 = arith.constant 0 : i32
    %c0_i32_0 = arith.constant 0 : i32
    return %arg0, %arg1, %c0_i32 : i32, i32, i32
  }
  func.func @transform_1(%arg0: i32, %arg1: i32) -> (i32, i32) {
    %c0_i32 = arith.constant 0 : i32
    %c0_i32_0 = arith.constant 0 : i32
    %c0_i32_1 = arith.constant 0 : i32
    return %c0_i32, %c0_i32_0 : i32, i32
  }
  func.func @transform_2(%arg0: i32, %arg1: i32) -> (i32, i32) {
    %c0_i32 = arith.constant 0 : i32
    %c0_i32_0 = arith.constant 0 : i32
    return %arg1, %c0_i32 : i32, i32
  }
  func.func @transform_3(%arg0: i32, %arg1: i32) -> (i32, i32) {
    %c0_i32 = arith.constant 0 : i32
    %c0_i32_0 = arith.constant 0 : i32
    return %arg1, %c0_i32 : i32, i32
  }
  func.func @transform_4(%arg0: i32, %arg1: i32) -> (i32, i32, i32) {
    %c0_i32 = arith.constant 0 : i32
    %c0_i32_0 = arith.constant 0 : i32
    return %arg0, %arg1, %c0_i32 : i32, i32, i32
  }
  func.func @transform_5(%arg0: i32, %arg1: i32) -> (i32, i32, i32) {
    %c0_i32 = arith.constant 0 : i32
    %c0_i32_0 = arith.constant 0 : i32
    return %arg0, %arg1, %c0_i32 : i32, i32, i32
  }
  func.func @transform_6(%arg0: i32, %arg1: i32) -> (i32, i32, i32) {
    %c0_i32 = arith.constant 0 : i32
    %c0_i32_0 = arith.constant 0 : i32
    return %arg0, %arg1, %c0_i32 : i32, i32, i32
  }
}

</mosaic_0001>

<bundles_post_ra>
// kernel: tpu_custom_call.1
= control target key start
LH: loop header
LB: loop body
LE: loop exit
PB: predicated region body
PF: predicated region fallthrough
CT: control target
= control target key end

     0   :  { %12 = vsyncpa [#allocation3], 0  ;;  %s1500_s0 = inlined_call_operand.hbm [shape: bf16[2,8,32], index: 0, kind: input, shape index: {}]   ;;  %s1501_s1 = inlined_call_operand.hbm [shape: bf16[32,96], index: 1, kind: input, shape index: {}]   ;;  %s1502_s2 = inlined_call_operand.hbm [shape: f32[8,16], index: 2, kind: input, shape index: {}]   ;;  %s1503_s3 = inlined_call_operand.vmem [shape: f32[8,16], index: 3, kind: input, shape index: {}]   ;;  %s1504_s4 = inlined_call_operand.hbm [shape: bf16[2,8,32], index: 4, kind: output, shape index: {0}]   ;;  %s1505_s5 = inlined_call_operand.hbm [shape: bf16[2,8,32], index: 5, kind: output, shape index: {1}]   ;;  %s1506_s6 = inlined_call_operand.hbm [shape: bf16[2,8,32], index: 6, kind: output, shape index: {2}]  }
   0x1   :  { %14 = vsyncpa [#allocation3 + $0x1], 0 }
   0x2   :  { %15 = vsyncpa [#allocation6], 0 }
   0x3   :  { %16 = vsyncpa [#allocation4], 0 }
   0x4   :  { %18 = vsyncpa [#allocation4 + $0x1], 0 }
   0x5   :  { %19 = vsyncpa [#allocation10], 0 }
   0x6   :  { %21 = vsyncpa [#allocation10 + $0x1], 0  ;;  %s1166_s21 = smov 0   ;;  %s1168_s22 = smov 0  }
   0x7   :  { %s1170_s23 = smov 0   ;;  %s1172_s24 = smov 0  }
   0x8   :  { %s1174_s25 = smov 0   ;;  %s1176_s26 = smov 0  }
   0x9 LB: > { %s1197_s27 = sadd.s32 4294967295, %s1113_s26   ;;  %s1508_s28 = sadd.s32 4294967294, %s1113_s26   ;;  %s1113_s26 = sphi %s1176_s26, %s27_s26   ;;  %s1109_s25 = sphi %s1174_s25, %s1531_s25   ;;  %s1105_s24 = sphi %s1172_s24, %s1530_s24   ;;  %s1101_s23 = sphi %s1170_s23, %s1529_s23   ;;  %s1097_s22 = sphi %s1168_s22, %s1528_s22   ;;  %s1093_s21 = sphi %s1166_s21, %s1527_s21  }
   0xa   : > { %p61_p0 = scmp.ne.s32.totalorder %s1097_s22, %s1093_s21  ;;  %p1507_p1 = scmp.eq.s32.totalorder %s1197_s27, 0 }
   0xb   : > { %p166_p3 = scmp.eq.s32.totalorder %s1508_s28, 1  ;;  %p734_p5 = scmp.ge.s32.totalorder %s1113_s26, 1 }
   0xc   : > { %p1208_p4 = por %p1507_p1, %p61_p0  ;;  %p229_p7 = scmp.lt.s32.totalorder %s1113_s26, 3 }
   0xd   : > { %p1213_p6 = por %p166_p3, %p61_p0  ;;  %s1115_s8 = smov [#allocation5]  }
   0xe   : > { %s1512_s29 = scalar_select %p1208_p4, 1, 0 }
   0xf   : > { %s1513_s30 = scalar_select %p1213_p6, 1, 0 }
  0x10   : > { %p1218_p8 = pnand %p734_p5, %p229_p7  ;;  %s241_s9 = sshll.u32 %s1115_s8, 4  ;;  %s1222_s9 = int_to_ptr.vmem [resolvable:$true] %s241_s9 }
  0x11   : > { %s1116_s11 = smov [#allocation7]   ;;  %s881_s15 = scalar_lea.hbm %s1501_s1, 256 }
  0x12   : > { %p792_p9 = pneg %p1218_p8  ;;  %s257_s12 = sshll.u32 %s1116_s11, 4  ;;  %s1233_s12 = int_to_ptr.vmem [resolvable:$true] %s257_s12 }
  0x13   : > { %p882_p12 = scmp.ne.s32.totalorder %s1501_s1, %s881_s15  ;;  %p888_p5 = scmp.lt.u32.totalorder %s881_s15, %s1501_s1 }
  0x14   : > { %p1229_p11 = pnand %p792_p9, %p1507_p1 }
  0x16   : > { %p883_p13 = pneg %p1229_p11 }
  0x18   : > { %p884_p0 = pnand %p883_p13, %p882_p12 }
  0x1a   : > { %p885_p3 = pneg %p884_p0 }
  0x1c   : > { %p890_p7 = pnand %p888_p5, %p885_p3 }
  0x1e   : > { %893 = shalt.err (!%p890_p7)
}
  0x1f   : > { %s894_s20 = scalar_lea.vmem %s1222_s9, 256  ;;  %p902_p2 = scmp.lt.s32.totalorder %s1222_s9, %s1222_s9 }
  0x20   : > { %p895_p9 = scmp.ne.s32.totalorder %s1222_s9, %s894_s20  ;;  %p903_p12 = scmp.lt.s32.totalorder %s894_s20, %s894_s20 }
  0x22   : > { %p897_p10 = pnand %p895_p9, %p883_p13  ;;  %p904_p0 = por %p903_p12, %p902_p2 }
  0x24   : > { %p898_p1 = pneg %p897_p10 }
  0x26   : > { %p905_p6 = pnand %p904_p0, %p898_p1 }
  0x28   : > { %908 = shalt.err (!%p905_p6)
}
  0x29   : > { %s1117_s8 = smov 64   ;;  %s1118_s11 = smov 4  }
  0x2a   : > { %795 = dma.hbm_to_vmem [thread:$0]  (!%p1229_p11), %s1501_s1, 256, %s1222_s9, [#allocation6], %s1117_s8, %s1117_s8, %s1118_s11  }
  0x2b   : > { %s909_s17 = scalar_lea.hbm %s1502_s2, 128 }
  0x2c   : > { %p910_p2 = scmp.ne.s32.totalorder %s1502_s2, %s909_s17  ;;  %p916_p10 = scmp.lt.u32.totalorder %s909_s17, %s1502_s2 }
  0x2e   : > { %p912_p1 = pnand %p910_p2, %p883_p13 }
  0x30   : > { %p913_p6 = pneg %p912_p1 }
  0x32   : > { %p918_p3 = pnand %p916_p10, %p913_p6 }
  0x34   : > { %921 = shalt.err (!%p918_p3)
}
  0x35   : > { %s922_s9 = scalar_lea.vmem %s1233_s12, 128  ;;  %p930_p12 = scmp.lt.s32.totalorder %s1233_s12, %s1233_s12 }
  0x36   : > { %p923_p5 = scmp.ne.s32.totalorder %s1233_s12, %s922_s9  ;;  %p931_p0 = scmp.lt.s32.totalorder %s922_s9, %s922_s9 }
  0x38   : > { %p925_p7 = pnand %p923_p5, %p883_p13  ;;  %p932_p2 = por %p931_p0, %p930_p12 }
  0x3a   : > { %p926_p9 = pneg %p925_p7 }
  0x3c   : > { %p933_p1 = pnand %p932_p2, %p926_p9 }
  0x3e   : > { %936 = shalt.err (!%p933_p1)
}
  0x3f   : > { %798 = dma.hbm_to_vmem [thread:$0]  (!%p1229_p11), %s1502_s2, 128, %s1233_s12, [#allocation6]  }
  0x40   : > { %s39_s11 = sadd.s32 1, %s1109_s25  ;;  %s48_s13 = sadd.s32 1, %s1101_s23 }
  0x41   : > { %p41_p13 = scmp.ge.s32.totalorder %s39_s11, 2  ;;  %p55_p6 = scmp.ne.s32.totalorder %s1101_s23, %s1097_s22 }
  0x42   : > { %p56_p10 = scmp.eq.s32.totalorder %s1113_s26, 0  ;;  %p815_p3 = scmp.lt.s32.totalorder %s1113_s26, 2 }
  0x43   : > { %s1533_s11 = smov (%p41_p13, %s39_s11), 0  ;;  %p1516_p7 = scmp.eq.s32.totalorder %s1197_s27, 1 }
  0x44   : > { %p57_p5 = por %p56_p10, %p55_p6  ;;  %s43_s14 = ssub.s32 %s1109_s25, %s1533_s11 }
  0x45   : > { %p1297_p9 = por %p1516_p7, %p55_p6  ;;  %s275_s15 = sand.u32 1, %s1101_s23  }
  0x46   : > { %p46_p12 = scmp.eq.s32.totalorder %s43_s14, 0  ;;  %s739_s12 = sshll.u32 %s275_s15, 2 }
  0x47   : > { %s1517_s10 = scalar_select %p1297_p9, 1, 0 }
  0x48   : > { %s740_s16 = sshll.u32 %s1109_s25, 6  ;;  %s279_s9 = scalar_lea.vmem [#allocation2], %s739_s12 }
  0x49   : > { %s1306_s17 = scalar_select %p46_p12, %s1101_s23, %s48_s13  }
  0x4a   : > { %s1311_s20 = scalar_lea.hbm %s1500_s0, %s740_s16  ;;  %s287_s28 = sshll.u32 %s279_s9, 4  ;;  %s1319_s28 = int_to_ptr.vmem [resolvable:$true] %s287_s28 }
  0x4b   : > { %p1315_p11 = pnand %p815_p3, %p57_p5  ;;  %s276_s13 = scalar_lea.sflag [#allocation3], %s275_s15 }
  0x4c   : > { %s937_s14 = scalar_lea.hbm %s1311_s20, 64  ;;  %s942_s18 = scalar_lea.hbm %s1500_s0, 128 }
  0x4d   : > { %p938_p0 = scmp.ne.s32.totalorder %s1311_s20, %s937_s14  ;;  %p939_p2 = pneg %p1315_p11 }
  0x4e   : > { %p943_p6 = scmp.lt.u32.totalorder %s1311_s20, %s1500_s0  ;;  %p944_p10 = scmp.lt.u32.totalorder %s942_s18, %s937_s14 }
  0x4f   : > { %p940_p1 = pnand %p939_p2, %p938_p0  ;;  %p946_p5 = scmp.lt.u32.totalorder %s937_s14, %s1311_s20 }
  0x50   : > { %p945_p3 = por %p944_p10, %p943_p6 }
  0x51   : > { %p941_p13 = pneg %p940_p1 }
  0x52   : > { %p947_p7 = por %p946_p5, %p945_p3 }
  0x54   : > { %p948_p12 = pnand %p947_p7, %p941_p13 }
  0x56   : > { %951 = shalt.err (!%p948_p12)
}
  0x57   : > { %s952_s15 = scalar_lea.vmem %s1319_s28, 64  ;;  %s1119_s12 = smov [#allocation2]  }
  0x58   : > { %p953_p0 = scmp.ne.s32.totalorder %s1319_s28, %s952_s15  ;;  %s957_s16 = sshll.u32 %s1119_s12, 4  ;;  %s958_s16 = int_to_ptr.vmem [resolvable:$false] %s957_s16 }
  0x59   : > { %s959_s19 = scalar_lea.vmem %s958_s16, 128  ;;  %p960_p4 = scmp.lt.s32.totalorder %s1319_s28, %s958_s16 }
  0x5a   : > { %p955_p1 = pnand %p953_p0, %p939_p2  ;;  %p961_p6 = scmp.lt.s32.totalorder %s959_s19, %s952_s15 }
  0x5c   : > { %p956_p9 = pneg %p955_p1  ;;  %p962_p10 = por %p961_p6, %p960_p4 }
  0x5e   : > { %p963_p3 = pnand %p962_p10, %p956_p9 }
  0x60   : > { %966 = shalt.err (!%p963_p3)
}
  0x61   : > { %802 = dma.hbm_to_vmem [thread:$0]  (!%p1315_p11), %s1311_s20, 64, %s1319_s28, %s276_s13  }
  0x62   : > { %296 = sbr.rel (%p1218_p8) target bundleno = 604 (0x25c), region = 36  ;;  %s1349_s14 = sand.u32 (!%p1218_p8), 1, %s1097_s22  }
  0x63   : > { %s1352_s18 = sshll.u32 (!%p1218_p8), %s1349_s14, 2  ;;  %s299_s9 = scalar_lea.sflag (!%p1218_p8), [#allocation3], %s1349_s14 }
  0x64   : > { %s302_s15 = scalar_lea.vmem (!%p1218_p8), [#allocation2], %s1352_s18  ;;  %p1519_p4 = scmp.ne.s32.totalorder (!%p1218_p8), %s1512_s29, 0 }
  0x69   : > { %1076 = dma.done.wait (%p1519_p4), %s299_s9, 64  }
  0x6a   : > { %1078 = vsyncadd (%p1519_p4), %s299_s9, 4294967232  ;;  %p1520_p9 = scmp.eq.s32.totalorder %s1197_s27, 0 }
  0x6c   : > { %1080 = dma.done.wait (%p1520_p9), [#allocation6], 384   ;;  %p1521_p8 = pmov %p1520_p9 }
  0x6d   : > { %v1120_v0 = vmov 0.0   ;;  %vm1121_vm0 = vmmov 0   ;;  %v879_v1 = vld [vmem:[#allocation5] sm:$0xff]   ;;  %v880_v2 = vld [vmem:[#allocation5 + $0x8] sm:$0xff]   ;;  %v360_v3 = vld [vmem:[%s1503_s3] sm:$0xff]  ;;  %s1122_s29 = smov 48  }
  0x6e   : > { %1082 = vsyncadd (%p1521_p8), [#allocation6], 4294966912  ;;  %768 = vmatprep.subr.bf16.mxu0 %v1120_v0  ;;  %772 = vmatprep.mubr.msk.bf16.mxu0 %vm1121_vm0, %v1120_v0  ;;  %v359_v4 = vld [vmem:[#allocation7] sm:$0xff]  ;;  %s1123_s28 = smov 32   ;;  %v358_v5 = vld [vmem:[%s302_s15] sm:$0xf] }
  0x6f   : > { %769 = vmatpush3.bf16.msra.mxu0 %v879_v1  ;;  %453 = vrot.lane.b32.xlu0 %v360_v3, %s1122_s29  ;;  %vm377_vm1 = vcmask 261120   ;;  %s1124_s8 = smov 16   ;;  %s1125_s13 = smov 112   ;;  %vm433_vm2 = vcmask 125952   ;;  %vm447_vm3 = vcmask 257152  }
  0x70   : > { %770 = vmatprep.subr.bf16.mxu0 %v1120_v0  ;;  %449 = vrot.lane.b32.xlu1 %v359_v4, %s1123_s28  ;;  %s1126_s12 = smov 96   ;;  %s1368_s16 = sshll.u32 %s1105_s24, 6 }
  0x71   : > { %s338_s19 = scalar_lea.vmem [#allocation8], %s1352_s18  ;;  %s1127_s15 = smov 64  }
  0x72   : > { %s525_s9 = sshll.u32 %s338_s19, 4  ;;  %s501_s24 = scalar_lea.sflag [#allocation4], %s1349_s14  ;;  %s1378_s9 = int_to_ptr.vmem [resolvable:$true] %s525_s9 }
  0x73   : > { %771 = vmatpush3.bf16.msra.mxu0 %v880_v2  ;;  %474 = vrot.lane.b32.xlu0 %v360_v3, %s1123_s28  ;;  %s967_s28 = scalar_lea.vmem %s1378_s9, 64  ;;  %p1522_p2 = scmp.ne.s32.totalorder %s1517_s10, 0 }
  0x74   : > { %423 = vrot.lane.b32.xlu1 %v360_v3, %s1124_s8  ;;  %p968_p11 = scmp.ne.s32.totalorder %s1378_s9, %s967_s28 }
  0x76   : > { %773 = vmatmul.mubr.msk.bf16.vlgmr.msra.gmra.mrb[0].mxu0 %vm377_vm1, %v358_v5  ;;  %p969_p13 = pnand %p968_p11, %p1522_p2 }
  0x77   : > { %470 = vrot.lane.b32.xlu0 %v359_v4, %s1122_s29  ;;  %s1376_s29 = scalar_lea.hbm %s1504_s4, %s1368_s16 }
  0x78   : > { %p970_p5 = pneg %p969_p13 }
  0xe1   : > { %v454_v6 = vpop.permute.xlu0 %453 }
  0xe2   : > { %v450_v7 = vpop.permute.xlu1 %449 }
  0xe5   : > { %v475_v8 = vpop.permute.xlu0 %474 }
  0xe6   : > { %v424_v13 = vpop.permute.xlu1 %423 }
  0xe9   : > { %v471_v18 = vpop.permute.xlu0 %470 }
 0x149   : > { %v415_v9 = vpop.f32.mrb[0].mxu0 }
 0x14a   : > { %v774_v10 = vpop.f32.mrb[1].mxu0  ;;  %v477_v11 = vmul.f32 %v475_v8, %v415_v9  ;;  %v456_v12 = vmul.f32 %v454_v6, %v415_v9  ;;  %v426_v16 = vmul.f32 %v424_v13, %v415_v9  ;;  %v440_v17 = vmul.f32 %v415_v9, %v360_v3 }
 0x14b   : > { %v418_v14 = vpop.f32.mrb[2].mxu0  ;;  %v473_v19 = vmul.f32 %v471_v18, %v415_v9  ;;  %v452_v20 = vmul.f32 %v450_v7, %v415_v9  ;;  %v421_v27 = vmul.f32 %v415_v9, %v359_v4  ;;  %v764_v33 = vpack.c.bf16 %v415_v9, %v415_v9 }
 0x14c   : > { %479 = vrot.lane.b32.xlu0 %v477_v11, %s1124_s8  ;;  %458 = vrot.lane.b32.xlu1 %v456_v12, %s1125_s13  ;;  %v775_v15 = vpop.f32.mrb[3].mxu0 }
 0x150   : > { %436 = vrot.lane.b32.xlu1 %v359_v4, %s1124_s8  ;;  %428 = vrot.lane.b32.xlu0 %v426_v16, %s1125_s13 }
 0x154   : > { %442 = vrot.lane.b32.xlu1 %v440_v17, %s1124_s8  ;;  %s1128_s8 = smov [#allocation8]  }
 0x155   : > { %s971_s13 = sshll.u32 %s1128_s8, 4  ;;  %s972_s13 = int_to_ptr.vmem [resolvable:$false] %s971_s13 }
 0x156   : > { %p974_p7 = scmp.lt.s32.totalorder %s1378_s9, %s972_s13 }
 0x1be   : > { %v480_v21 = vpop.permute.xlu0 %479  ;;  %v459_v22 = vpop.permute.xlu1 %458 }
 0x1bf   : > { %v482_v23 = vadd.f32 %v480_v21, %v473_v19  ;;  %v461_v24 = vsub.f32 %v452_v20, %v459_v22 }
 0x1c1   : > { %v763_v25 = vpack.c.bf16 %v482_v23, %v482_v23  ;;  %v762_v26 = vpack.c.bf16 %v461_v24, %v461_v24 }
 0x1c2   : > { %v437_v28 = vpop.permute.xlu1 %436  ;;  %v429_v29 = vpop.permute.xlu0 %428 }
 0x1c3   : > { %v431_v30 = vsub.f32 %v421_v27, %v429_v29  ;;  %487 = vrot.lane.b32.xlu1 %v763_v25, %s1126_s12  ;;  %466 = vrot.lane.b32.xlu0 %v762_v26, %s1126_s12  ;;  %v439_v31 = vmul.f32 %v437_v28, %v415_v9  ;;  %s973_s12 = scalar_lea.vmem %s972_s13, 128 }
 0x1c4   : > { %p975_p12 = scmp.lt.s32.totalorder %s973_s12, %s967_s28 }
 0x1c5   : > { %v432_v32 = vpack.c.bf16 %v431_v30, %v431_v30 }
 0x1c6   : > { %v443_v34 = vpop.permute.xlu1 %442  ;;  %p976_p0 = por %p975_p12, %p974_p7 }
 0x1c7   : > { %v445_v35 = vadd.f32 %v443_v34, %v439_v31  ;;  %495 = vrot.lane.b32.xlu0 %v764_v33, %s1127_s15  ;;  %434 = vst.msk [vmem:[%s338_s19] sm:$0xf] %vm433_vm2, %v432_v32 }
 0x1c8   : > { %p977_p1 = pnand %p976_p0, %p970_p5 }
 0x1c9   : > { %v446_v36 = vpack.c.bf16 %v445_v35, %v445_v35 }
 0x1cb   : > { %448 = vst.msk [vmem:[%s338_s19] sm:$0xf] %vm447_vm3, %v446_v36 }
 0x1cc   : > { %980 = shalt.err (!%p977_p1)
}
 0x1cd   : > { %s981_s14 = scalar_lea.hbm %s1376_s29, 64  ;;  %s985_s7 = scalar_lea.hbm %s1504_s4, 128 }
 0x1ce   : > { %p982_p6 = scmp.ne.s32.totalorder %s1376_s29, %s981_s14  ;;  %p986_p4 = scmp.lt.u32.totalorder %s1376_s29, %s1504_s4 }
 0x1cf   : > { %p987_p9 = scmp.lt.u32.totalorder %s985_s7, %s981_s14  ;;  %p989_p11 = scmp.lt.u32.totalorder %s981_s14, %s1376_s29 }
 0x1d0   : > { %p983_p10 = pnand %p982_p6, %p1522_p2 }
 0x1d1   : > { %p988_p8 = por %p987_p9, %p986_p4 }
 0x1d2   : > { %p984_p3 = pneg %p983_p10 }
 0x1d3   : > { %p990_p13 = por %p989_p11, %p988_p8 }
 0x1d5   : > { %p991_p5 = pnand %p990_p13, %p984_p3 }
 0x1d7   : > { %994 = shalt.err (!%p991_p5)
}
 0x1d8   : > { %786 = dma.vmem_to_hbm [thread:$0]  (%p1522_p2), %s1378_s9, 64, %s1376_s29, %s501_s24   ;;  %vm498_vm4 = vcmask 257024  }
 0x1d9   : > { %s505_s28 = sand.u32 1, %s1197_s27   ;;  %s345_s13 = scalar_lea.vmem [#allocation9], %s1352_s18 }
 0x1da   : > { %s539_s12 = sshll.u32 %s345_s13, 4  ;;  %s1511_s19 = scalar_lea.vmem [#allocation11], %s1352_s18  ;;  %s1414_s12 = int_to_ptr.vmem [resolvable:$true] %s539_s12 }
 0x1db   : > { %s553_s14 = sshll.u32 %s1511_s19, 4  ;;  %s1412_s20 = scalar_lea.hbm %s1505_s5, %s1368_s16  ;;  %s1424_s14 = int_to_ptr.vmem [resolvable:$true] %s553_s14 }
 0x1dc   : > { %s1422_s29 = scalar_lea.hbm %s1506_s6, %s1368_s16  ;;  %s1426_s24 = scalar_lea.sflag [#allocation10], %s505_s28 }
 0x1dd   : > { %s995_s8 = scalar_lea.vmem %s1414_s12, 64  ;;  %s1129_s15 = smov [#allocation9]  }
 0x1de   : > { %p996_p7 = scmp.ne.s32.totalorder %s1414_s12, %s995_s8  ;;  %s999_s7 = sshll.u32 %s1129_s15, 4  ;;  %s1000_s7 = int_to_ptr.vmem [resolvable:$false] %s999_s7 }
 0x1df   : > { %s1001_s19 = scalar_lea.vmem %s1000_s7, 128  ;;  %p1002_p1 = scmp.lt.s32.totalorder %s1414_s12, %s1000_s7 }
 0x1e0   : > { %p997_p12 = pnand %p996_p7, %p1522_p2  ;;  %p1003_p6 = scmp.lt.s32.totalorder %s1001_s19, %s995_s8 }
 0x1e2   : > { %p998_p0 = pneg %p997_p12  ;;  %p1004_p10 = por %p1003_p6, %p1002_p1 }
 0x1e4   : > { %p1005_p3 = pnand %p1004_p10, %p998_p0 }
 0x235   : > { %v488_v37 = vpop.permute.xlu1 %487  ;;  %v467_v38 = vpop.permute.xlu0 %466 }
 0x236   : > { %469 = vst.msk [vmem:[%s345_s13] sm:$0xf] %vm433_vm2, %v467_v38 }
 0x237   : > { %490 = vst.msk [vmem:[%s345_s13] sm:$0xf] %vm447_vm3, %v488_v37 }
 0x238   : > { %1008 = shalt.err (!%p1005_p3)
}
 0x239   : > { %s1009_s16 = scalar_lea.hbm %s1412_s20, 64  ;;  %s1013_s27 = scalar_lea.hbm %s1505_s5, 128 }
 0x23a   : > { %p1010_p4 = scmp.ne.s32.totalorder %s1412_s20, %s1009_s16  ;;  %p1014_p11 = scmp.lt.u32.totalorder %s1412_s20, %s1505_s5 }
 0x23b   : > { %p1015_p13 = scmp.lt.u32.totalorder %s1013_s27, %s1009_s16  ;;  %p1017_p7 = scmp.lt.u32.totalorder %s1009_s16, %s1412_s20 }
 0x23c   : > { %p1011_p9 = pnand %p1010_p4, %p1522_p2 }
 0x23d   : > { %p1016_p5 = por %p1015_p13, %p1014_p11 }
 0x23e   : > { %p1012_p8 = pneg %p1011_p9 }
 0x23f   : > { %p1018_p12 = por %p1017_p7, %p1016_p5 }
 0x241   : > { %p1019_p0 = pnand %p1018_p12, %p1012_p8 }
 0x243   : > { %1022 = shalt.err (!%p1019_p0)
}
 0x244   : > { %787 = dma.vmem_to_hbm [thread:$0]  (%p1522_p2), %s1414_s12, 64, %s1412_s20, %s1426_s24   ;;  %v496_v39 = vpop.permute.xlu0 %495 }
 0x245   : > { %s1523_s19 = scalar_lea.vmem [#allocation11], %s1352_s18  ;;  %s1023_s8 = scalar_lea.vmem %s1424_s14, 64 }
 0x246   : > { %499 = vst.msk [vmem:[%s1523_s19] sm:$0xf] %vm498_vm4, %v496_v39  ;;  %p1024_p1 = scmp.ne.s32.totalorder %s1424_s14, %s1023_s8  ;;  %s1130_s7 = smov [#allocation11]  }
 0x247   : > { %s1027_s16 = sshll.u32 %s1130_s7, 4  ;;  %s1028_s16 = int_to_ptr.vmem [resolvable:$false] %s1027_s16 }
 0x248   : > { %p1025_p6 = pnand %p1024_p1, %p1522_p2  ;;  %s1029_s28 = scalar_lea.vmem %s1028_s16, 128 }
 0x249   : > { %p1030_p3 = scmp.lt.s32.totalorder %s1424_s14, %s1028_s16  ;;  %p1031_p4 = scmp.lt.s32.totalorder %s1029_s28, %s1023_s8 }
 0x24a   : > { %p1026_p10 = pneg %p1025_p6 }
 0x24b   : > { %p1032_p9 = por %p1031_p4, %p1030_p3 }
 0x24d   : > { %p1033_p8 = pnand %p1032_p9, %p1026_p10 }
 0x24f   : > { %1036 = shalt.err (!%p1033_p8)
}
 0x250   : > { %s1037_s18 = scalar_lea.hbm %s1422_s29, 64  ;;  %s1041_s13 = scalar_lea.hbm %s1506_s6, 128 }
 0x251   : > { %p1038_p11 = scmp.ne.s32.totalorder %s1422_s29, %s1037_s18  ;;  %p1042_p7 = scmp.lt.u32.totalorder %s1422_s29, %s1506_s6 }
 0x252   : > { %p1043_p12 = scmp.lt.u32.totalorder %s1041_s13, %s1037_s18  ;;  %p1045_p1 = scmp.lt.u32.totalorder %s1037_s18, %s1422_s29 }
 0x253   : > { %p1039_p13 = pnand %p1038_p11, %p1522_p2 }
 0x254   : > { %p1044_p0 = por %p1043_p12, %p1042_p7 }
 0x255   : > { %p1040_p5 = pneg %p1039_p13 }
 0x256   : > { %p1046_p6 = por %p1045_p1, %p1044_p0 }
 0x258   : > { %p1047_p10 = pnand %p1046_p6, %p1040_p5 }
 0x25a   : > { %1050 = shalt.err (!%p1047_p10)
}
 0x25b   : > { %788 = dma.vmem_to_hbm [thread:$0]  (%p1522_p2), %s1424_s14, 64, %s1422_s29, %s1426_s24  }
 0x25c PF: > { %s565_s15 = sand.u32 1, %s1093_s21   ;;  %p1524_p3 = scmp.ne.s32.totalorder %s1513_s30, 0 }
 0x25d   : > { %p1525_p4 = scmp.ge.s32.totalorder %s1113_s26, 2  ;;  %s566_s19 = scalar_lea.sflag [#allocation4], %s565_s15 }
 0x25f   : > { %p804_p9 = pnand %p1525_p4, %p1524_p3 }
 0x261   : > { %1084 = dma.done.wait (!%p804_p9), %s566_s19, 64  }
 0x262   : > { %1086 = vsyncadd (!%p804_p9), %s566_s19, 4294967232  ;;  %s1526_s8 = sadd.s32 4294967294, %s1113_s26  }
 0x263   : > { %s574_s7 = sand.u32 1, %s1526_s8  }
 0x264   : > { %s575_s16 = scalar_lea.sflag [#allocation10], %s574_s7 }
 0x265   : > { %1088 = dma.done.wait (!%p804_p9), %s575_s16, 128  }
 0x266   : > { %1090 = vsyncadd (!%p804_p9), %s575_s16, 4294967168  ;;  %s27_s26 = sadd.s32 1, %s1113_s26   ;;  %s1527_s21 = smov %s1097_s22 }
 0x267   : > { %p24_p2 = scmp.ge.s32.totalorder %s27_s26, 4   ;;  %s1528_s22 = smov %s1101_s23 }
 0x268   : > { %s1529_s23 = smov %s1306_s17  ;;  %s1530_s24 = smov %s1109_s25 }
 0x269   : > { %s1531_s25 = smov %s1533_s11  ;;  %26 = sbr.rel (!%p24_p2) target bundleno = 9 (0x9), region = 125 }
 0x270   :  { %589 = vsyncpa [#allocation3], 1 }
 0x271   :  { %591 = vsyncpa [#allocation3 + $0x1], 1 }
 0x272   :  { %592 = vsyncpa [#allocation6], 1 }
 0x273   :  { %593 = vsyncpa [#allocation4], 1 }
 0x274   :  { %595 = vsyncpa [#allocation4 + $0x1], 1 }
 0x275   :  { %596 = vsyncpa [#allocation10], 1 }
 0x276   :  { %598 = vsyncpa [#allocation10 + $0x1], 1 }

</bundles_post_ra>
